<compile_context>
chip_gen: v7x
topology: tpu7x:2x2x1
jax: 0.10.0
libtpu: 0.0.40
codegen_flags: <defaults>
</compile_context>

<pallas_src>
import math

import numpy as np
import jax
import jax.numpy as jnp
from jax import lax
from jax.experimental import pallas as pl
from jax.experimental.pallas import tpu as pltpu

# Hash constants (stored as signed int32; wrapping int32 arithmetic == uint32 bitwise).
_PHI = np.uint32(0x9E3779B1).astype(np.int32)   # odd Weyl increment
_M1 = np.int32(0x7FEB352D)                      # lowbias32 multiplier 1
_M2 = np.uint32(0x846CA68B).astype(np.int32)    # lowbias32 multiplier 2
_ONE_F32_BITS = 0x3F800000                      # bit pattern of 1.0f


def _srl(x, k):
    """Logical right shift for int32 arrays (arithmetic shift + mask)."""
    return (x >> k) & ((1 << (32 - k)) - 1)


def _mix32(x):
    """lowbias32 finalizer: full-avalanche 32-bit integer hash (VPU-only ops)."""
    x = x ^ _srl(x, 16)
    x = x * _M1
    x = x ^ _srl(x, 15)
    x = x * _M2
    x = x ^ _srl(x, 16)
    return x


def _bits_to_unit_f32(bits):
    """int32 random bits -> f32 uniform in [0, 1) via the exponent trick."""
    m = _srl(bits, 9) | _ONE_F32_BITS           # mantissa of a float in [1, 2)
    return lax.bitcast_convert_type(m, jnp.float32) - 1.0


def _noise_kernel(seed_ref, scale_ref, x_ref, o_ref):
    tr, tc = x_ref.shape
    half = tc // 2
    i = pl.program_id(0)
    j = pl.program_id(1)
    pairs_per_row = pl.num_programs(1) * half    # = cols // 2 of the full slab

    # Global (row, uniform-pair) index -> tiling-independent noise streams.
    row = lax.broadcasted_iota(jnp.int32, (tr, half), 0) + i * tr
    col = lax.broadcasted_iota(jnp.int32, (tr, half), 1) + j * half
    pair = row * pairs_per_row + col

    seed = seed_ref[0]
    n1 = pair * 2
    n2 = n1 + 1
    bits1 = _mix32(n1 * _PHI + seed)
    bits2 = _mix32(n2 * _PHI + seed)

    u1 = _bits_to_unit_f32(bits1)                # [0, 1)
    u2 = _bits_to_unit_f32(bits2)                # [0, 1)

    # Box-Muller using both outputs: one uniform pair -> two independent N(0,1).
    r = jnp.sqrt(-2.0 * jnp.log(1.0 - u1))       # 1-u1 in (0, 1]: log is safe
    theta = jnp.float32(2.0 * math.pi) * u2
    z_cos = r * jnp.cos(theta)
    z_sin = r * jnp.sin(theta)

    scale = scale_ref[...]                       # (tr, 1) f32: |std| * rescaler per batch row
    xl = x_ref[:, :half].astype(jnp.float32)
    xr = x_ref[:, half:].astype(jnp.float32)
    o_ref[:, :half] = (xl + scale * z_cos).astype(o_ref.dtype)
    o_ref[:, half:] = (xr + scale * z_sin).astype(o_ref.dtype)


def _choose_lane_tile(cols, target=2048):
    """Largest lane-dense tile (pref. multiple of 256, then 128) dividing cols."""
    if cols <= target:
        return cols
    for step in (256, 128):
        c = (target // step) * step
        while c >= step:
            if cols % c == 0:
                return c
            c -= step
    return cols


def _choose_row_tile(rows, target=256):
    """Row tile: full rows if small, else a multiple-of-8 divisor <= target."""
    if rows <= target:
        return rows
    r = (target // 8) * 8
    while r >= 8:
        if rows % r == 0:
            return r
        r -= 8
    return rows


def add_gaussian_noise(x, std, seed, *, mean=0.0, normalize_to_input_size=False):
    """Pallas port of AddGaussianNoise.forward.

    x:   (N, ...) array — NCHW 4-D or (N, D) 2-D in the reference (any ndim >= 2 works).
    std: scalar / size-1 / per-batch (size N) array; broadcasts over the batch dim.
    `mean` is accepted for API parity; the reference forward never uses it.
    """
    del mean  # matches reference: forward never applies `mean`
    orig_shape = x.shape
    if x.ndim < 2:
        raise ValueError("expected input with a batch dimension (ndim >= 2)")
    rows = int(orig_shape[0])
    cols = int(np.prod(orig_shape[1:]))
    if cols % 2 != 0:
        # TODO(synk): odd feature counts would need an unpaired Box-Muller tail path.
        raise NotImplementedError("feature size must be even")

    rescaler = (1.0 / float(np.prod(orig_shape[1:]))) if normalize_to_input_size else 1.0

    # Per-batch-row scale |std| * rescaler, shape (rows, 1) f32.
    std_arr = jnp.atleast_1d(jnp.asarray(std, dtype=jnp.float32))
    scale = jnp.broadcast_to(
        (jnp.abs(std_arr) * jnp.float32(rescaler)).reshape(-1, 1), (rows, 1))

    x2d = x.reshape(rows, cols)                  # native dtype; casts happen in-kernel

    tr = _choose_row_tile(rows)
    tc = _choose_lane_tile(cols)
    grid = (rows // tr, cols // tc)

    seed_arr = jnp.asarray([seed], dtype=jnp.int32)

    n_elems = rows * cols
    cost = pl.CostEstimate(
        flops=30 * n_elems,
        transcendentals=2 * n_elems,
        bytes_accessed=2 * n_elems * x.dtype.itemsize + rows * 4,
    )

    out2d = pl.pallas_call(
        _noise_kernel,
        out_shape=jax.ShapeDtypeStruct((rows, cols), x.dtype),
        grid_spec=pltpu.PrefetchScalarGridSpec(
            num_scalar_prefetch=1,
            grid=grid,
            in_specs=[
                pl.BlockSpec((tr, 1), lambda i, j, seed: (i, 0)),    # per-row scale
                pl.BlockSpec((tr, tc), lambda i, j, seed: (i, j)),   # lane-dense x tile
            ],
            out_specs=pl.BlockSpec((tr, tc), lambda i, j, seed: (i, j)),
        ),
        compiler_params=pltpu.CompilerParams(
            dimension_semantics=("parallel", "parallel"),
            vmem_limit_bytes=32 * 1024 * 1024,   # tiles are <= ~2 MiB/block -> safe on v5e/v6e/v7x
        ),
        cost_estimate=cost,
    )(seed_arr, scale, x2d)

    return out2d.reshape(orig_shape)


if __name__ == "__main__":
    key = jax.random.PRNGKey(0)
    N, C, H, W = 2, 4, 16, 16
    x = jax.random.normal(key, (N, C, H, W), dtype=jnp.float32)

    # Module-style 1-element std parameter.
    std = jnp.array([0.5], dtype=jnp.float32)

    out = add_gaussian_noise(x, std, seed=1234, normalize_to_input_size=False)
    out = jax.block_until_ready(out)

    assert out.shape == x.shape and out.dtype == x.dtype

    # Loose sanity checks on the injected noise statistics.
    noise = np.asarray(out - x, dtype=np.float64).ravel()
    assert np.all(np.isfinite(noise))
    assert abs(noise.mean()) < 0.1
    assert abs(noise.std() - 0.5) < 0.1

    print("KERNEL_OK")
</pallas_src>

<mosaic_0001>
module attributes {stable_mosaic.version = 11 : i64} {
  func.func @_noise_kernel(%arg0: i32, %arg1: i32, %arg2: memref<1xi32, #tpu.memory_space<smem>>, %arg3: memref<2x1xf32, #tpu.memory_space<vmem>>, %arg4: memref<2x1024xf32, #tpu.memory_space<vmem>>, %arg5: memref<2x1024xf32, #tpu.memory_space<vmem>>) attributes {dimension_semantics = [#tpu.dimension_semantics<parallel>, #tpu.dimension_semantics<parallel>], iteration_bounds = array<i64: 1, 1>, scalar_prefetch = 1 : i64, scratch_operands = 0 : i64, tpu.core_type = #tpu.core_type<tc>, window_params = [{transform_indices = @transform_0, window_bounds = array<i64: 2, 1>}, {transform_indices = @transform_1, window_bounds = array<i64: 2, 1024>}, {transform_indices = @transform_2, window_bounds = array<i64: 2, 1024>}]} {
    %0 = tpu.iota {dimensions = array<i32: 0>} : vector<2x512xi32>
    %c2_i32 = arith.constant 2 : i32
    %1 = arith.muli %arg0, %c2_i32 : i32
    %2 = vector.broadcast %1 : i32 to vector<2x512xi32>
    %3 = arith.addi %0, %2 : vector<2x512xi32>
    %4 = tpu.iota {dimensions = array<i32: 1>} : vector<2x512xi32>
    %c512_i32 = arith.constant 512 : i32
    %5 = arith.muli %arg1, %c512_i32 : i32
    %6 = vector.broadcast %5 : i32 to vector<2x512xi32>
    %7 = arith.addi %4, %6 : vector<2x512xi32>
    %c512_i32_0 = arith.constant 512 : i32
    %8 = vector.broadcast %c512_i32_0 : i32 to vector<2x512xi32>
    %9 = arith.muli %3, %8 : vector<2x512xi32>
    %10 = arith.addi %9, %7 : vector<2x512xi32>
    %c0 = arith.constant 0 : index
    %11 = memref.load %arg2[%c0] : memref<1xi32, #tpu.memory_space<smem>>
    %c2_i32_1 = arith.constant 2 : i32
    %12 = vector.broadcast %c2_i32_1 : i32 to vector<2x512xi32>
    %13 = arith.muli %10, %12 : vector<2x512xi32>
    %c1_i32 = arith.constant 1 : i32
    %14 = vector.broadcast %c1_i32 : i32 to vector<2x512xi32>
    %15 = arith.addi %13, %14 : vector<2x512xi32>
    %c-1640531535_i32 = arith.constant -1640531535 : i32
    %16 = vector.broadcast %c-1640531535_i32 : i32 to vector<2x512xi32>
    %17 = arith.muli %13, %16 : vector<2x512xi32>
    %18 = vector.broadcast %11 : i32 to vector<2x512xi32>
    %19 = arith.addi %17, %18 : vector<2x512xi32>
    %c16_i32 = arith.constant 16 : i32
    %20 = vector.broadcast %c16_i32 : i32 to vector<2x512xi32>
    %21 = arith.shrsi %19, %20 : vector<2x512xi32>
    %c65535_i32 = arith.constant 65535 : i32
    %22 = vector.broadcast %c65535_i32 : i32 to vector<2x512xi32>
    %23 = arith.andi %21, %22 : vector<2x512xi32>
    %24 = arith.xori %19, %23 : vector<2x512xi32>
    %c2146121005_i32 = arith.constant 2146121005 : i32
    %25 = vector.broadcast %c2146121005_i32 : i32 to vector<2x512xi32>
    %26 = arith.muli %24, %25 : vector<2x512xi32>
    %c15_i32 = arith.constant 15 : i32
    %27 = vector.broadcast %c15_i32 : i32 to vector<2x512xi32>
    %28 = arith.shrsi %26, %27 : vector<2x512xi32>
    %c131071_i32 = arith.constant 131071 : i32
    %29 = vector.broadcast %c131071_i32 : i32 to vector<2x512xi32>
    %30 = arith.andi %28, %29 : vector<2x512xi32>
    %31 = arith.xori %26, %30 : vector<2x512xi32>
    %c-2073254261_i32 = arith.constant -2073254261 : i32
    %32 = vector.broadcast %c-2073254261_i32 : i32 to vector<2x512xi32>
    %33 = arith.muli %31, %32 : vector<2x512xi32>
    %c16_i32_2 = arith.constant 16 : i32
    %34 = vector.broadcast %c16_i32_2 : i32 to vector<2x512xi32>
    %35 = arith.shrsi %33, %34 : vector<2x512xi32>
    %c65535_i32_3 = arith.constant 65535 : i32
    %36 = vector.broadcast %c65535_i32_3 : i32 to vector<2x512xi32>
    %37 = arith.andi %35, %36 : vector<2x512xi32>
    %38 = arith.xori %33, %37 : vector<2x512xi32>
    %c-1640531535_i32_4 = arith.constant -1640531535 : i32
    %39 = vector.broadcast %c-1640531535_i32_4 : i32 to vector<2x512xi32>
    %40 = arith.muli %15, %39 : vector<2x512xi32>
    %41 = vector.broadcast %11 : i32 to vector<2x512xi32>
    %42 = arith.addi %40, %41 : vector<2x512xi32>
    %c16_i32_5 = arith.constant 16 : i32
    %43 = vector.broadcast %c16_i32_5 : i32 to vector<2x512xi32>
    %44 = arith.shrsi %42, %43 : vector<2x512xi32>
    %c65535_i32_6 = arith.constant 65535 : i32
    %45 = vector.broadcast %c65535_i32_6 : i32 to vector<2x512xi32>
    %46 = arith.andi %44, %45 : vector<2x512xi32>
    %47 = arith.xori %42, %46 : vector<2x512xi32>
    %c2146121005_i32_7 = arith.constant 2146121005 : i32
    %48 = vector.broadcast %c2146121005_i32_7 : i32 to vector<2x512xi32>
    %49 = arith.muli %47, %48 : vector<2x512xi32>
    %c15_i32_8 = arith.constant 15 : i32
    %50 = vector.broadcast %c15_i32_8 : i32 to vector<2x512xi32>
    %51 = arith.shrsi %49, %50 : vector<2x512xi32>
    %c131071_i32_9 = arith.constant 131071 : i32
    %52 = vector.broadcast %c131071_i32_9 : i32 to vector<2x512xi32>
    %53 = arith.andi %51, %52 : vector<2x512xi32>
    %54 = arith.xori %49, %53 : vector<2x512xi32>
    %c-2073254261_i32_10 = arith.constant -2073254261 : i32
    %55 = vector.broadcast %c-2073254261_i32_10 : i32 to vector<2x512xi32>
    %56 = arith.muli %54, %55 : vector<2x512xi32>
    %c16_i32_11 = arith.constant 16 : i32
    %57 = vector.broadcast %c16_i32_11 : i32 to vector<2x512xi32>
    %58 = arith.shrsi %56, %57 : vector<2x512xi32>
    %c65535_i32_12 = arith.constant 65535 : i32
    %59 = vector.broadcast %c65535_i32_12 : i32 to vector<2x512xi32>
    %60 = arith.andi %58, %59 : vector<2x512xi32>
    %61 = arith.xori %56, %60 : vector<2x512xi32>
    %c9_i32 = arith.constant 9 : i32
    %62 = vector.broadcast %c9_i32 : i32 to vector<2x512xi32>
    %63 = arith.shrsi %38, %62 : vector<2x512xi32>
    %c8388607_i32 = arith.constant 8388607 : i32
    %64 = vector.broadcast %c8388607_i32 : i32 to vector<2x512xi32>
    %65 = arith.andi %63, %64 : vector<2x512xi32>
    %c1065353216_i32 = arith.constant 1065353216 : i32
    %66 = vector.broadcast %c1065353216_i32 : i32 to vector<2x512xi32>
    %67 = arith.ori %65, %66 : vector<2x512xi32>
    %68 = tpu.bitcast %67 : vector<2x512xi32> -> vector<2x512xf32>
    %cst = arith.constant 1.000000e+00 : f32
    %69 = vector.broadcast %cst : f32 to vector<2x512xf32>
    %70 = arith.subf %68, %69 : vector<2x512xf32>
    %c9_i32_13 = arith.constant 9 : i32
    %71 = vector.broadcast %c9_i32_13 : i32 to vector<2x512xi32>
    %72 = arith.shrsi %61, %71 : vector<2x512xi32>
    %c8388607_i32_14 = arith.constant 8388607 : i32
    %73 = vector.broadcast %c8388607_i32_14 : i32 to vector<2x512xi32>
    %74 = arith.andi %72, %73 : vector<2x512xi32>
    %c1065353216_i32_15 = arith.constant 1065353216 : i32
    %75 = vector.broadcast %c1065353216_i32_15 : i32 to vector<2x512xi32>
    %76 = arith.ori %74, %75 : vector<2x512xi32>
    %77 = tpu.bitcast %76 : vector<2x512xi32> -> vector<2x512xf32>
    %cst_16 = arith.constant 1.000000e+00 : f32
    %78 = vector.broadcast %cst_16 : f32 to vector<2x512xf32>
    %79 = arith.subf %77, %78 : vector<2x512xf32>
    %cst_17 = arith.constant 1.000000e+00 : f32
    %80 = vector.broadcast %cst_17 : f32 to vector<2x512xf32>
    %81 = arith.subf %80, %70 : vector<2x512xf32>
    %82 = math.log %81 : vector<2x512xf32>
    %cst_18 = arith.constant -2.000000e+00 : f32
    %83 = vector.broadcast %cst_18 : f32 to vector<2x512xf32>
    %84 = arith.mulf %83, %82 : vector<2x512xf32>
    %85 = math.sqrt %84 : vector<2x512xf32>
    %cst_19 = arith.constant 6.28318548 : f32
    %86 = vector.broadcast %cst_19 : f32 to vector<2x512xf32>
    %87 = arith.mulf %86, %79 : vector<2x512xf32>
    %88 = math.cos %87 : vector<2x512xf32>
    %89 = arith.mulf %85, %88 : vector<2x512xf32>
    %90 = math.sin %87 : vector<2x512xf32>
    %91 = arith.mulf %85, %90 : vector<2x512xf32>
    %c0_20 = arith.constant 0 : index
    %c0_21 = arith.constant 0 : index
    %92 = vector.load %arg3[%c0_20, %c0_21] : memref<2x1xf32, #tpu.memory_space<vmem>>, vector<2x1xf32>
    %c0_22 = arith.constant 0 : index
    %c0_23 = arith.constant 0 : index
    %93 = vector.load %arg4[%c0_22, %c0_23] : memref<2x1024xf32, #tpu.memory_space<vmem>>, vector<2x512xf32>
    %c0_24 = arith.constant 0 : index
    %c512 = arith.constant 512 : index
    %94 = vector.load %arg4[%c0_24, %c512] : memref<2x1024xf32, #tpu.memory_space<vmem>>, vector<2x512xf32>
    %95 = vector.broadcast %92 : vector<2x1xf32> to vector<2x512xf32>
    %96 = arith.mulf %95, %89 : vector<2x512xf32>
    %97 = arith.addf %93, %96 : vector<2x512xf32>
    %c0_25 = arith.constant 0 : index
    %c0_26 = arith.constant 0 : index
    %98 = vector.load %arg5[%c0_25, %c0_26] : memref<2x1024xf32, #tpu.memory_space<vmem>>, vector<2x512xf32>
    tpu.vector_store %arg5[%c0_25, %c0_26], %97 {strides = array<i32>} : memref<2x1024xf32, #tpu.memory_space<vmem>>, vector<2x512xf32>,
    %99 = vector.broadcast %92 : vector<2x1xf32> to vector<2x512xf32>
    %100 = arith.mulf %99, %91 : vector<2x512xf32>
    %101 = arith.addf %94, %100 : vector<2x512xf32>
    %c0_27 = arith.constant 0 : index
    %c512_28 = arith.constant 512 : index
    %102 = vector.load %arg5[%c0_27, %c512_28] : memref<2x1024xf32, #tpu.memory_space<vmem>>, vector<2x512xf32>
    tpu.vector_store %arg5[%c0_27, %c512_28], %101 {strides = array<i32>} : memref<2x1024xf32, #tpu.memory_space<vmem>>, vector<2x512xf32>,
    return
  }
  func.func @transform_0(%arg0: i32, %arg1: i32, %arg2: memref<1xi32, #tpu.memory_space<smem>>) -> (i32, i32) {
    %c0_i32 = arith.constant 0 : i32
    %c0_i32_0 = arith.constant 0 : i32
    return %arg0, %c0_i32 : i32, i32
  }
  func.func @transform_1(%arg0: i32, %arg1: i32, %arg2: memref<1xi32, #tpu.memory_space<smem>>) -> (i32, i32) {
    %c0_i32 = arith.constant 0 : i32
    return %arg0, %arg1 : i32, i32
  }
  func.func @transform_2(%arg0: i32, %arg1: i32, %arg2: memref<1xi32, #tpu.memory_space<smem>>) -> (i32, i32) {
    %c0_i32 = arith.constant 0 : i32
    return %arg0, %arg1 : i32, i32
  }
}

</mosaic_0001>

<bundles_post_ra>
// kernel: tpu_custom_call.1
= control target key start
LH: loop header
LB: loop body
LE: loop exit
PB: predicated region body
PF: predicated region fallthrough
CT: control target
= control target key end

     0   :  { %9 = vsyncpa [#allocation5], 0  ;;  %s1834_s0 = inlined_call_operand.<no memory space> [shape: s32[1], index: 0, kind: input, shape index: {}]   ;;  %s1835_s1 = inlined_call_operand.vmem [shape: f32[2,1], index: 1, kind: input, shape index: {}]   ;;  %s1836_s2 = inlined_call_operand.hbm [shape: f32[2,1024], index: 2, kind: input, shape index: {}]   ;;  %s1837_s3 = inlined_call_operand.hbm [shape: f32[2,1024], index: 3, kind: output, shape index: {}]  }
   0x1   :  { %10 = vsyncpa [#allocation6], 0  ;;  %s1343_s12 = smov [#allocation4]   ;;  %s1295_s16 = scalar_lea.hbm %s1836_s2, 256 }
   0x2   :  { %s19_s13 = sshll.u32 %s1343_s12, 4  ;;  %p1296_p0 = scmp.ne.s32.totalorder %s1836_s2, %s1295_s16  ;;  %s20_s13 = int_to_ptr.vmem [resolvable:$true] %s19_s13 }
   0x3   :  { %p1299_p1 = scmp.lt.u32.totalorder %s1295_s16, %s1836_s2 }
   0x5   :  { %p1301_p2 = pnand %p1299_p1, %p1296_p0 }
   0x7   :  { %1304 = shalt.err (!%p1301_p2)
}
   0x8   :  { %s1305_s21 = scalar_lea.vmem %s20_s13, 256  ;;  %p1310_p4 = scmp.lt.s32.totalorder %s20_s13, %s20_s13 }
   0x9   :  { %p1306_p3 = scmp.ne.s32.totalorder %s20_s13, %s1305_s21  ;;  %p1311_p5 = scmp.lt.s32.totalorder %s1305_s21, %s1305_s21 }
   0xb   :  { %p1312_p6 = por %p1311_p5, %p1310_p4 }
   0xd   :  { %p1313_p7 = pnand %p1312_p6, %p1306_p3 }
   0xf   :  { %1316 = shalt.err (!%p1313_p7)
}
  0x10   :  { %22 = dma.hbm_to_vmem [thread:$0]  %s1836_s2, 256, %s20_s13, [#allocation5]  }
  0x11   :  { %1339 = dma.done.wait [#allocation5], 256  }
  0x12   :  { %1340 = vsyncadd [#allocation5], 4294967040  ;;  %v26_v0 = vlaneseq  ;;  %v1344_v1 = vmov 0   ;;  %v1085_v12 = vld [vmem:[%s1835_s1] sm:$0x3]  ;;  %v60_v20 = vstv %s1834_s0  ;;  %s1352_s0 = smov [#allocation7]  }
  0x13   :  { %1262 = vset.pattern.permute.xlu0 %v1344_v1  ;;  %s1155_s1 = sshll.u32 %s1352_s0, 4  ;;  %s1156_s1 = int_to_ptr.vmem [resolvable:$true] %s1155_s1 }
  0x14   :  { %v1385_v2 = vshrl.u32 %v26_v0, 7  ;;  %v32_v3 = vand.u32 127, %v26_v0  ;;  %1090 = vperm.xlu0 %1262, %v1085_v12   ;;  %s1317_s27 = scalar_lea.vmem %s1156_s1, 256  ;;  %p1322_p9 = scmp.lt.s32.totalorder %s1156_s1, %s1156_s1 }
  0x15   :  { %p1318_p8 = scmp.ne.s32.totalorder %s1156_s1, %s1317_s27  ;;  %p1323_p10 = scmp.lt.s32.totalorder %s1317_s27, %s1317_s27 }
  0x16   :  { %v33_v4 = vadd.s32 128, %v32_v3  ;;  %v34_v5 = vadd.s32 256, %v32_v3  ;;  %v35_v6 = vadd.s32 384, %v32_v3  ;;  %v42_v7 = vmul.u32 512, %v1385_v2 }
  0x17   :  { %p1324_p11 = por %p1323_p10, %p1322_p9 }
  0x18   :  { %v43_v8 = vadd.s32 %v42_v7, %v32_v3  ;;  %v44_v9 = vadd.s32 %v42_v7, %v33_v4  ;;  %v45_v10 = vadd.s32 %v42_v7, %v34_v5  ;;  %v46_v11 = vadd.s32 %v42_v7, %v35_v6 }
  0x19   :  { %p1325_p12 = pnand %p1324_p11, %p1318_p8 }
  0x1a   :  { %v48_v13 = vmul.u32 2, %v43_v8  ;;  %v49_v14 = vmul.u32 2, %v44_v9 }
  0x1b   :  { %v50_v15 = vmul.u32 2, %v45_v10  ;;  %v51_v16 = vmul.u32 2, %v46_v11 }
  0x1c   :  { %v52_v17 = vadd.s32 1, %v48_v13  ;;  %v53_v18 = vadd.s32 1, %v49_v14  ;;  %v56_v34 = vmul.u32 2654435761, %v48_v13  ;;  %v57_v50 = vmul.u32 2654435761, %v49_v14 }
  0x1d   :  { %v54_v19 = vadd.s32 1, %v50_v15  ;;  %v55_v21 = vadd.s32 1, %v51_v16  ;;  %v58_v56 = vmul.u32 2654435761, %v50_v15  ;;  %v59_v59 = vmul.u32 2654435761, %v51_v16 }
  0x1e   :  { %v109_v22 = vmul.u32 2654435761, %v52_v17  ;;  %v110_v23 = vmul.u32 2654435761, %v53_v18  ;;  %v61_v42 = vadd.s32 %v60_v20, %v56_v34  ;;  %v62_v60 = vadd.s32 %v60_v20, %v57_v50 }
  0x1f   :  { %v111_v24 = vmul.u32 2654435761, %v54_v19  ;;  %v112_v28 = vmul.u32 2654435761, %v55_v21  ;;  %v63_v3 = vadd.s32 %v60_v20, %v58_v56  ;;  %v64_v6 = vadd.s32 %v60_v20, %v59_v59 }
  0x20   :  { %v113_v25 = vadd.s32 %v109_v22, %v60_v20  ;;  %v114_v26 = vadd.s32 %v110_v23, %v60_v20  ;;  %v1164_v51 = vshrl.u32 %v61_v42, 16  ;;  %v1165_v7 = vshrl.u32 %v62_v60, 16 }
  0x21   :  { %v115_v27 = vadd.s32 %v111_v24, %v60_v20  ;;  %v116_v36 = vadd.s32 %v112_v28, %v60_v20  ;;  %v1166_v13 = vshrl.u32 %v63_v3, 16  ;;  %v1167_v16 = vshrl.u32 %v64_v6, 16 }
  0x22   :  { %v1176_v29 = vshrl.u32 %v113_v25, 16  ;;  %v1177_v30 = vshrl.u32 %v114_v26, 16  ;;  %v73_v61 = vxor.u32 %v1164_v51, %v61_v42  ;;  %v74_v17 = vxor.u32 %v1165_v7, %v62_v60 }
  0x23   :  { %v1178_v31 = vshrl.u32 %v115_v27, 16  ;;  %v1179_v44 = vshrl.u32 %v116_v36, 16  ;;  %v75_v23 = vxor.u32 %v1166_v13, %v63_v3 }
  0x24   :  { %v125_v32 = vxor.u32 %v1176_v29, %v113_v25  ;;  %v126_v33 = vxor.u32 %v1177_v30, %v114_v26  ;;  %v77_v8 = vmul.u32 2146121005, %v73_v61  ;;  %v76_v25 = vxor.u32 %v1167_v16, %v64_v6 }
  0x25   :  { %v127_v35 = vxor.u32 %v1178_v31, %v115_v27  ;;  %v128_v52 = vxor.u32 %v1179_v44, %v116_v36  ;;  %v78_v26 = vmul.u32 2146121005, %v74_v17 }
  0x26   :  { %v129_v37 = vmul.u32 2146121005, %v125_v32  ;;  %v130_v38 = vmul.u32 2146121005, %v126_v33  ;;  %v1168_v18 = vshrl.u32 %v77_v8, 15 }
  0x27   :  { %v131_v39 = vmul.u32 2146121005, %v127_v35  ;;  %v132_v62 = vmul.u32 2146121005, %v128_v52  ;;  %v1169_v35 = vshrl.u32 %v78_v26, 15 }
  0x28   :  { %v1180_v40 = vshrl.u32 %v129_v37, 15  ;;  %v1181_v41 = vshrl.u32 %v130_v38, 15  ;;  %v89_v27 = vxor.u32 %v1168_v18, %v77_v8  ;;  %v79_v32 = vmul.u32 2146121005, %v75_v23 }
  0x29   :  { %v1182_v43 = vshrl.u32 %v131_v39, 15  ;;  %v1183_v9 = vshrl.u32 %v132_v62, 15  ;;  %v80_v34 = vmul.u32 2146121005, %v76_v25  ;;  %v1348_v8 = vmov 2102212464  }
  0x2a   :  { %v141_v45 = vxor.u32 %v1180_v40, %v129_v37  ;;  %v142_v46 = vxor.u32 %v1181_v41, %v130_v38  ;;  %v93_v36 = vmul.u32 2221713035, %v89_v27  ;;  %v1170_v42 = vshrl.u32 %v79_v32, 15 }
  0x2b   :  { %v143_v47 = vxor.u32 %v1182_v43, %v131_v39  ;;  %v144_v19 = vxor.u32 %v1183_v9, %v132_v62  ;;  %v1171_v44 = vshrl.u32 %v80_v34, 15 }
  0x2c   :  { %v145_v48 = vmul.u32 2221713035, %v141_v45  ;;  %v146_v49 = vmul.u32 2221713035, %v142_v46  ;;  %v1401_v45 = vxor.u32 %v1169_v35, %v78_v26  ;;  %v1172_v46 = vshrl.u32 %v93_v36, 16 }
  0x2d   :  { %v147_v55 = vmul.u32 2221713035, %v143_v47  ;;  %v148_v28 = vmul.u32 2221713035, %v144_v19  ;;  %v1350_v19 = vmov 1326507024  }
  0x2e   :  { %v1184_v53 = vshrl.u32 %v145_v48, 16  ;;  %v1185_v54 = vshrl.u32 %v146_v49, 16  ;;  %v1415_v56 = vxor.u32 %v1172_v46, %v93_v36 }
  0x2f   :  { %v1186_v1 = vshrl.u32 %v147_v55, 16  ;;  %v1187_v37 = vshrl.u32 %v148_v28, 16 }
  0x30   :  { %v157_v57 = vxor.u32 %v1184_v53, %v145_v48  ;;  %v158_v58 = vxor.u32 %v1185_v54, %v146_v49  ;;  %v1410_v53 = vxor.u32 %v1170_v42, %v79_v32  ;;  %v1412_v54 = vxor.u32 %v1171_v44, %v80_v34 }
  0x31   :  { %v159_v12 = vxor.u32 %v1186_v1, %v147_v55  ;;  %v1403_v47 = vxor.u32 %v1187_v37, %v148_v28  ;;  %v94_v55 = vmul.u32 2221713035, %v1401_v45 }
  0x32   :  { %v1196_v63 = vshrl.u32 %v157_v57, 9  ;;  %v1197_v0 = vshrl.u32 %v158_v58, 9  ;;  %v1345_v57 = vmov 683565275   ;;  %v95_v42 = vmul.u32 2221713035, %v1410_v53 }
  0x33   :  { %v1198_v22 = vshrl.u32 %v159_v12, 9  ;;  %v1199_v59 = vshrl.u32 %v1403_v47, 9  ;;  %v1349_v12 = vmov 920167782   ;;  %v1173_v44 = vshrl.u32 %v94_v55, 16 }
  0x34   :  { %v189_v4 = vor.u32 1065353216, %v1196_v63  ;;  %v190_v5 = vor.u32 1065353216, %v1197_v0  ;;  %v1346_v0 = vmov 2475754826   ;;  %v1188_v47 = vshrl.u32 %v1415_v56, 9 }
  0x35   :  { %v191_v30 = vor.u32 1065353216, %v1198_v22 }
  0x36   :  { %v1200_v10 = vadd.f32 -1.0, %v189_v4  ;;  %v1201_v11 = vadd.f32 -1.0, %v190_v5  ;;  %v1347_v5 = vmov 2131351028  }
  0x37   :  { %v1202_v39 = vadd.f32 -1.0, %v191_v30 }
  0x38   :  { %v1394_v14 = vmul.f32 6.2831855, %v1200_v10  ;;  %v1396_v15 = vmul.f32 6.2831855, %v1201_v11 }
  0x39   :  { %v1408_v50 = vmul.f32 6.2831855, %v1202_v39 }
  0x3a   :  { %v252_v21 = vand.u32 2139095040, %v1394_v14  ;;  %v355_v24 = vand.u32 2139095040, %v1396_v15  ;;  %v249_v38 = vand.u32 2147483647, %v1394_v14  ;;  %v352_v49 = vand.u32 2147483647, %v1396_v15 }
  0x3b   :  { %v458_v3 = vand.u32 2139095040, %v1408_v50 }
  0x3c   :  { %v253_v20 = vshrl.u32 %v252_v21, 23  ;;  %v356_v31 = vshrl.u32 %v355_v24, 23  ;;  %v256_v48 = vand.u32 8388607, %v249_v38  ;;  %v359_v62 = vand.u32 8388607, %v352_v49 }
  0x3d   :  { %v459_v23 = vshrl.u32 %v458_v3, 23 }
  0x3e   :  { %v1204_v29 = vadd.s32 4294967169, %v253_v20  ;;  %v1208_v41 = vadd.s32 4294967169, %v356_v31  ;;  %v257_v60 = vor.u32 8388608, %v256_v48  ;;  %v360_v35 = vor.u32 8388608, %v359_v62 }
  0x3f   :  { %v1212_v36 = vadd.s32 4294967169, %v459_v23  ;;  %v192_v48 = vor.u32 1065353216, %v1199_v59 }
  0x40   :  { %v259_v33 = vadd.s32 1, %v1204_v29  ;;  %v362_v52 = vadd.s32 1, %v1208_v41  ;;  %v297_v25 = vshll.u32 %v257_v60, 8  ;;  %v1448_v62 = vshll.u32 %v360_v35, 8 }
  0x42   :  { %vm260_vm0 = vcmp.gt.s32.totalorder %v259_v33, 0  ;;  %vm363_vm1 = vcmp.gt.s32.totalorder %v362_v52, 0 }
  0x43   :  { %v261_v40 = vsel %vm260_vm0, %v259_v33, 0  ;;  %v364_v26 = vsel %vm363_vm1, %v362_v52, 0 }
  0x44   :  { %v263_v43 = vand.u32 31, %v261_v40  ;;  %v262_v61 = vshrl.u32 %v261_v40, 5  ;;  %v365_v40 = vshrl.u32 %v364_v26, 5  ;;  %v366_v41 = vand.u32 31, %v364_v26 }
  0x46   :  { %v264_v51 = vsub.s32 32, %v263_v43  ;;  %v266_v58 = vshll.u32 %v1345_v57, %v263_v43  ;;  %v269_v4 = vshll.u32 %v1346_v0, %v263_v43  ;;  %v272_v7 = vshll.u32 %v1347_v5, %v263_v43 }
  0x47   :  { %v275_v11 = vshll.u32 %v1348_v8, %v263_v43  ;;  %v278_v16 = vshll.u32 %v1349_v12, %v263_v43  ;;  %vm281_vm2 = vcmp.lt.s32.totalorder %v262_v61, 1  ;;  %vm283_vm3 = vcmp.lt.s32.totalorder %v262_v61, 3 }
  0x48   :  { %v265_v63 = vshrl.u32 %v1345_v57, %v264_v51  ;;  %v267_v1 = vshrl.u32 %v1346_v0, %v264_v51  ;;  %v270_v6 = vshrl.u32 %v1347_v5, %v264_v51  ;;  %v273_v9 = vshrl.u32 %v1348_v8, %v264_v51 }
  0x49   :  { %v276_v13 = vshrl.u32 %v1349_v12, %v264_v51  ;;  %v279_v21 = vshrl.u32 %v1350_v19, %v264_v51  ;;  %vm284_vm4 = vcmp.lt.s32.totalorder %v262_v61, 4  ;;  %vm282_vm5 = vcmp.lt.s32.totalorder %v262_v61, 2 }
  0x4a   :  { %v268_v10 = vor.u32 %v267_v1, %v266_v58  ;;  %v271_v17 = vor.u32 %v270_v6, %v269_v4  ;;  %v274_v18 = vor.u32 %v273_v9, %v272_v7  ;;  %v96_v43 = vmul.u32 2221713035, %v1412_v54 }
  0x4b   :  { %v277_v22 = vor.u32 %v276_v13, %v275_v11  ;;  %v280_v20 = vor.u32 %v279_v21, %v278_v16  ;;  %v367_v3 = vsub.s32 32, %v366_v41  ;;  %v369_v4 = vshll.u32 %v1345_v57, %v366_v41 }
  0x4c   :  { %v286_v24 = vsel %vm284_vm4, %v274_v18, 2102212464  ;;  %v289_v27 = vsel %vm281_vm2, %v268_v10, %v271_v17  ;;  %v293_v29 = vsel %vm281_vm2, %v271_v17, %v274_v18  ;;  %v285_v30 = vsel %vm281_vm2, %v265_v63, %v268_v10 }
  0x4d   :  { %v290_v28 = vsel %vm284_vm4, %v277_v22, 920167782  ;;  %v287_v31 = vsel %vm283_vm3, %v271_v17, %v286_v24  ;;  %v294_v33 = vsel %vm284_vm4, %v280_v20, 1326507024  ;;  %v465_v63 = vadd.s32 1, %v1212_v36 }
  0x4e   :  { %v291_v32 = vsel %vm283_vm3, %v274_v18, %v290_v28  ;;  %v295_v34 = vsel %vm283_vm3, %v277_v22, %v294_v33  ;;  %v288_v46 = vsel %vm282_vm5, %v285_v30, %v287_v31  ;;  %vm384_vm6 = vcmp.lt.s32.totalorder %v365_v40, 1 }
  0x4f   :  { %v292_v37 = vsel %vm282_vm5, %v289_v27, %v291_v32  ;;  %v296_v39 = vsel %vm282_vm5, %v293_v29, %v295_v34  ;;  %v304_v1 = vmul.u32 %v297_v25, %v288_v46  ;;  %v372_v61 = vshll.u32 %v1346_v0, %v366_v41 }
  0x50   :  { %v1441_v51 = vmul.u32.u64.low %v297_v25, %v296_v39  ;;  %v1442_v52 = vmul.u32.u64.high %v297_v25, %v296_v39, %v1441_v51  ;;  %v1444_v58 = vmul.u32.u64.low %v297_v25, %v292_v37  ;;  %v1445_v60 = vmul.u32.u64.high %v297_v25, %v292_v37, %v1444_v58 }
  0x51   :  { %v375_v56 = vshll.u32 %v1347_v5, %v366_v41  ;;  %v378_v59 = vshll.u32 %v1348_v8, %v366_v41  ;;  %v381_v6 = vshll.u32 %v1349_v12, %v366_v41  ;;  %v368_v7 = vshrl.u32 %v1345_v57, %v367_v3 }
  0x52   :  { %vm306_vm7 = vc.u32 %v1442_v52, %v1444_v58  ;;  %v370_v9 = vshrl.u32 %v1346_v0, %v367_v3  ;;  %vm385_vm8 = vcmp.lt.s32.totalorder %v365_v40, 2  ;;  %v307_v10 = vadd.s32 1, %v1445_v60 }
  0x53   :  { %v373_v11 = vshrl.u32 %v1347_v5, %v367_v3  ;;  %v376_v13 = vshrl.u32 %v1348_v8, %v367_v3  ;;  %v379_v16 = vshrl.u32 %v1349_v12, %v367_v3  ;;  %v382_v18 = vshrl.u32 %v1350_v19, %v367_v3 }
  0x54   :  { %v371_v17 = vor.u32 %v370_v9, %v369_v4  ;;  %vm386_vm9 = vcmp.lt.s32.totalorder %v365_v40, 3  ;;  %vm387_vm10 = vcmp.lt.s32.totalorder %v365_v40, 4  ;;  %v308_v21 = vsel %vm306_vm7, %v307_v10, %v1445_v60 }
  0x55   :  { %v374_v22 = vor.u32 %v373_v11, %v372_v61  ;;  %v377_v23 = vor.u32 %v376_v13, %v375_v56  ;;  %v380_v20 = vor.u32 %v379_v16, %v378_v59  ;;  %v309_v24 = vadd.s32 %v308_v21, %v304_v1 }
  0x56   :  { %v383_v25 = vor.u32 %v382_v18, %v381_v6  ;;  %v388_v26 = vsel %vm384_vm6, %v368_v7, %v371_v17  ;;  %vm466_vm11 = vcmp.gt.s32.totalorder %v465_v63, 0  ;;  %v455_v4 = vand.u32 2147483647, %v1408_v50 }
  0x57   :  { %v389_v27 = vsel %vm387_vm10, %v377_v23, 2102212464  ;;  %v392_v28 = vsel %vm384_vm6, %v371_v17, %v374_v22  ;;  %v393_v29 = vsel %vm387_vm10, %v380_v20, 920167782  ;;  %v396_v30 = vsel %vm384_vm6, %v374_v22, %v377_v23 }
  0x58   :  { %v310_v31 = vadd.s32 536870912, %v309_v24  ;;  %v390_v32 = vsel %vm386_vm9, %v374_v22, %v389_v27  ;;  %v394_v33 = vsel %vm386_vm9, %v377_v23, %v393_v29  ;;  %v397_v34 = vsel %vm387_vm10, %v383_v25, 1326507024 }
  0x59   :  { %v391_v35 = vsel %vm385_vm8, %v388_v26, %v390_v32  ;;  %v395_v36 = vsel %vm385_vm8, %v392_v28, %v394_v33  ;;  %v398_v37 = vsel %vm386_vm9, %v380_v20, %v397_v34  ;;  %v467_v39 = vsel %vm466_vm11, %v465_v63, 0 }
  0x5a   :  { %v1476_v41 = vshrl.u32 %v310_v31, 30  ;;  %v399_v46 = vsel %vm385_vm8, %v396_v30, %v398_v37  ;;  %v1480_v51 = vmul.u32.u64.low %v1448_v62, %v395_v36  ;;  %v1481_v60 = vmul.u32.u64.high %v1448_v62, %v395_v36, %v1480_v51 }
  0x5b   :  { %v1485_v1 = vmul.u32.u64.low %v1448_v62, %v399_v46  ;;  %v1486_v3 = vmul.u32.u64.high %v1448_v62, %v399_v46, %v1485_v1  ;;  %v1174_v61 = vshrl.u32 %v95_v42, 16  ;;  %v1175_v63 = vshrl.u32 %v96_v43, 16 }
  0x5c   :  { %v312_v40 = vshll.u32 %v1476_v41, 30  ;;  %v469_v56 = vand.u32 31, %v467_v39  ;;  %v106_v59 = vxor.u32 %v1173_v44, %v94_v55  ;;  %v169_v6 = vor.u32 1065353216, %v1188_v47 }
  0x5d   :  { %v407_v7 = vmul.u32 %v1448_v62, %v391_v35  ;;  %v1203_v9 = vadd.f32 -1.0, %v192_v48  ;;  %v410_v11 = vadd.s32 1, %v1481_v60  ;;  %vm409_vm12 = vc.u32 %v1486_v3, %v1480_v51 }
  0x5e   :  { %v1497_v10 = vsub.s32 %v309_v24, %v312_v40  ;;  %v470_v13 = vsub.s32 32, %v469_v56  ;;  %v462_v16 = vand.u32 8388607, %v455_v4  ;;  %v1504_v17 = vshrl.u32 %v467_v39, 5 }
  0x5f   :  { %v107_v45 = vxor.u32 %v1174_v61, %v95_v42  ;;  %v108_v55 = vxor.u32 %v1175_v63, %v96_v43  ;;  %v411_v44 = vsel %vm409_vm12, %v410_v11, %v1481_v60  ;;  %v472_v47 = vshll.u32 %v1345_v57, %v469_v56 }
  0x60   :  { %v412_v48 = vadd.s32 %v411_v44, %v407_v7  ;;  %v473_v62 = vshrl.u32 %v1346_v0, %v470_v13  ;;  %v475_v18 = vshll.u32 %v1346_v0, %v469_v56  ;;  %v476_v21 = vshrl.u32 %v1347_v5, %v470_v13 }
  0x61   :  { %v1189_v22 = vshrl.u32 %v106_v59, 9  ;;  %v1192_v23 = vadd.f32 -1.0, %v169_v6  ;;  %v1515_v20 = vmul.f32 6.2831855, %v1203_v9  ;;  %v315_v53 = vsub.s32 0, %v1497_v10 }
  0x62   :  { %v413_v42 = vadd.s32 536870912, %v412_v48  ;;  %v463_v54 = vor.u32 8388608, %v462_v16  ;;  %v478_v43 = vshll.u32 %v1347_v5, %v469_v56  ;;  %vm490_vm13 = vcmp.lt.s32.totalorder %v1504_v17, 4 }
  0x63   :  { %v474_v24 = vor.u32 %v473_v62, %v472_v47  ;;  %v479_v25 = vshrl.u32 %v1348_v8, %v470_v13  ;;  %v481_v26 = vshll.u32 %v1348_v8, %v469_v56  ;;  %v482_v27 = vshrl.u32 %v1349_v12, %v470_v13 }
  0x64   :  { %v1523_v28 = vshrl.u32 %v413_v42, 30  ;;  %v477_v29 = vor.u32 %v476_v21, %v475_v18  ;;  %v484_v30 = vshll.u32 %v1349_v12, %v469_v56  ;;  %v485_v31 = vshrl.u32 %v1350_v19, %v470_v13 }
  0x65   :  { %v1205_v32 = vmin.u32 %v315_v53, %v1497_v10  ;;  %v480_v33 = vor.u32 %v479_v25, %v478_v43  ;;  %v483_v34 = vor.u32 %v482_v27, %v481_v26  ;;  %vm487_vm14 = vcmp.lt.s32.totalorder %v1504_v17, 1 }
  0x66   :  { %v1190_v35 = vshrl.u32 %v107_v45, 9  ;;  %v1191_v36 = vshrl.u32 %v108_v55, 9  ;;  %v415_v37 = vshll.u32 %v1523_v28, 30  ;;  %v471_v39 = vshrl.u32 %v1345_v57, %v470_v13 }
  0x67   :  { %v486_v46 = vor.u32 %v485_v31, %v484_v30  ;;  %vm489_vm15 = vcmp.lt.s32.totalorder %v1504_v17, 3  ;;  %v492_v60 = vsel %vm490_vm13, %v480_v33, 2102212464  ;;  %v496_v1 = vsel %vm490_vm13, %v483_v34, 920167782 }
  0x68   :  { %v1536_v61 = vsub.s32 %v412_v48, %v415_v37  ;;  %vm488_vm0 = vcmp.lt.s32.totalorder %v1504_v17, 2  ;;  %v495_v63 = vsel %vm487_vm14, %v474_v24, %v477_v29  ;;  %v561_v40 = vand.u32 2139095040, %v1515_v20 }
  0x69   :  { %v201_v56 = vsub.f32 1.0, %v1192_v23  ;;  %v317_v59 = vclz %v1205_v32  ;;  %v503_v6 = vshll.u32 %v463_v54, 8  ;;  %v491_v9 = vsel %vm487_vm14, %v471_v39, %v474_v24 }
  0x6a   :  { %v418_v7 = vsub.s32 0, %v1536_v61  ;;  %v493_v11 = vsel %vm489_vm15, %v477_v29, %v492_v60  ;;  %v497_v13 = vsel %vm489_vm15, %v480_v33, %v496_v1  ;;  %v170_v16 = vor.u32 1065353216, %v1189_v22 }
  0x6b   :  { %v498_v45 = vsel %vm488_vm0, %v495_v63, %v497_v13  ;;  %v499_v55 = vsel %vm487_vm14, %v477_v29, %v480_v33  ;;  %v500_v44 = vsel %vm490_vm13, %v486_v46, 1326507024  ;;  %v171_v47 = vor.u32 1065353216, %v1190_v35 }
  0x6c   :  { %v172_v48 = vor.u32 1065353216, %v1191_v36  ;;  %v1209_v62 = vmin.u32 %v418_v7, %v1536_v61  ;;  %v562_v18 = vshrl.u32 %v561_v40, 23  ;;  %1263 = vlog2.f32 %v201_v56 }
  0x6d   :  { %v1206_v21 = vadd.s32 4294967294, %v317_v59  ;;  %v494_v23 = vsel %vm488_vm0, %v491_v9, %v493_v11  ;;  %v501_v22 = vsel %vm489_vm15, %v483_v34, %v500_v44  ;;  %v1193_v26 = vadd.f32 -1.0, %v170_v16 }
  0x6e   :  { %v420_v53 = vclz %v1209_v62  ;;  %v502_v42 = vsel %vm488_vm0, %v499_v55, %v501_v22  ;;  %v1562_v54 = vmul.u32.u64.low %v503_v6, %v498_v45  ;;  %v1563_v43 = vmul.u32.u64.high %v503_v6, %v498_v45, %v1562_v54 }
  0x6f   :  { %v1566_v24 = vmul.u32.u64.low %v503_v6, %v502_v42  ;;  %v1567_v25 = vmul.u32.u64.high %v503_v6, %v502_v42, %v1566_v24  ;;  %v1216_v27 = vadd.s32 4294967169, %v562_v18  ;;  %v1194_v29 = vadd.f32 -1.0, %v171_v47 }
  0x70   :  { %v1195_v30 = vadd.f32 -1.0, %v172_v48  ;;  %v510_v31 = vmul.u32 %v503_v6, %v494_v23  ;;  %vm1207_vm1 = vcmp.lt.s32.totalorder %v1206_v21, 0  ;;  %v1210_v32 = vadd.s32 4294967294, %v420_v53 }
  0x71   :  { %v513_v33 = vadd.s32 1, %v1563_v43  ;;  %v568_v34 = vadd.s32 1, %v1216_v27  ;;  %vm512_vm2 = vc.u32 %v1567_v25, %v1562_v54  ;;  %v202_v17 = vsub.f32 1.0, %v1193_v26 }
  0x72   :  { %v203_v36 = vsub.f32 1.0, %v1194_v29  ;;  %v320_v37 = vsel %vm1207_vm1, 0, %v1206_v21  ;;  %v204_v46 = vsub.f32 1.0, %v1195_v30  ;;  %vm1211_vm4 = vcmp.lt.s32.totalorder %v1210_v32, 0 }
  0x73   :  { %v514_v35 = vsel %vm512_vm2, %v513_v33, %v1563_v43  ;;  %vm569_vm3 = vcmp.gt.s32.totalorder %v568_v34, 0  ;;  %1265 = vlog2.f32 %v202_v17  ;;  %v305_v56 = vadd.s32 %v1444_v58, %v1442_v52 }
  0x74   :  { %v515_v39 = vadd.s32 %v514_v35, %v510_v31  ;;  %v570_v60 = vsel %vm569_vm3, %v568_v34, 0  ;;  %v321_v59 = vsub.s32 32, %v320_v37  ;;  %v325_v6 = vsub.s32 4294967266, %v320_v37 }
  0x75   :  { %v572_v40 = vand.u32 31, %v570_v60  ;;  %1267 = vlog2.f32 %v203_v36  ;;  %v1575_v7 = vsel %vm1211_vm4, 0, %v1210_v32  ;;  %v558_v13 = vand.u32 2147483647, %v1515_v20 }
  0x76   :  { %v1264_v1 = vpop.eup %1263  ;;  %v516_v63 = vadd.s32 536870912, %v515_v39  ;;  %1269 = vlog2.f32 %v204_v46  ;;  %v322_v45 = vshll.u32 %v1497_v10, %v320_v37  ;;  %v408_v55 = vadd.s32 %v1480_v51, %v1486_v3 }
  0x77   :  { %v573_v11 = vsub.s32 32, %v572_v40  ;;  %v1580_v16 = vmul.f32 0.6931472, %v1264_v1  ;;  %v323_v58 = vshrl.u32 %v305_v56, %v321_v59  ;;  %v326_v44 = vadd.s32 127, %v325_v6 }
  0x78   :  { %v1577_v9 = vshrl.u32 %v516_v63, 30  ;;  %v428_v47 = vsub.s32 4294967266, %v1575_v7  ;;  %v575_v48 = vshll.u32 %v1345_v57, %v572_v40  ;;  %v578_v21 = vshll.u32 %v1346_v0, %v572_v40 }
  0x79   :  { %v576_v18 = vshrl.u32 %v1346_v0, %v573_v11  ;;  %v579_v23 = vshrl.u32 %v1347_v5, %v573_v11  ;;  %v565_v10 = vand.u32 8388607, %v558_v13  ;;  %v571_v51 = vshrl.u32 %v570_v60, 5 }
  0x7a   :  { %v518_v52 = vshll.u32 %v1577_v9, 30  ;;  %v581_v3 = vshll.u32 %v1347_v5, %v572_v40  ;;  %v584_v22 = vshll.u32 %v1348_v8, %v572_v40  ;;  %v582_v42 = vshrl.u32 %v1348_v8, %v573_v11 }
  0x7b   :  { %v585_v43 = vshrl.u32 %v1349_v12, %v573_v11  ;;  %v587_v24 = vshll.u32 %v1349_v12, %v572_v40  ;;  %v1601_v26 = vor.u32 %v323_v58, %v322_v45  ;;  %v424_v0 = vsub.s32 32, %v1575_v7 }
  0x7c   :  { %v1588_v62 = vsub.s32 %v515_v39, %v518_v52  ;;  %v429_v27 = vadd.s32 127, %v428_v47  ;;  %v588_v29 = vshrl.u32 %v1350_v19, %v573_v11  ;;  %v327_v30 = vshll.u32 %v326_v44, 23 }
  0x7d   :  { %v577_v31 = vor.u32 %v576_v18, %v575_v48  ;;  %v580_v32 = vor.u32 %v579_v23, %v578_v21  ;;  %v1266_v33 = vpop.eup %1265  ;;  %v566_v34 = vor.u32 8388608, %v565_v10  ;;  %v574_v8 = vshrl.u32 %v1345_v57, %v573_v11 }
  0x7e   :  { %v521_v53 = vsub.s32 0, %v1588_v62  ;;  %v586_v17 = vor.u32 %v585_v43, %v584_v22  ;;  %vm590_vm5 = vcmp.lt.s32.totalorder %v571_v51, 1  ;;  %v583_v36 = vor.u32 %v582_v42, %v581_v3 }
  0x7f   :  { %v1268_v35 = vpop.eup %1267  ;;  %v589_v37 = vor.u32 %v588_v29, %v587_v24  ;;  %vm593_vm6 = vcmp.lt.s32.totalorder %v571_v51, 4  ;;  %v425_v19 = vshll.u32 %v1536_v61, %v1575_v7  ;;  %v426_v46 = vshrl.u32 %v408_v55, %v424_v0 }
  0x80   :  { %v1213_v5 = vmin.u32 %v521_v53, %v1588_v62  ;;  %v1270_v39 = vpop.eup %1269  ;;  %v430_v60 = vshll.u32 %v429_v27, 23  ;;  %vm592_vm7 = vcmp.lt.s32.totalorder %v571_v51, 3  ;;  %vm591_vm8 = vcmp.lt.s32.totalorder %v571_v51, 2 }
  0x81   :  { %v595_v63 = vsel %vm593_vm6, %v583_v36, 2102212464  ;;  %v598_v57 = vsel %vm590_vm5, %v577_v31, %v580_v32  ;;  %v328_v40 = vor.u32 4788187, %v327_v30  ;;  %v594_v56 = vsel %vm590_vm5, %v574_v8, %v577_v31 }
  0x82   :  { %v523_v12 = vclz %v1213_v5  ;;  %v599_v59 = vsel %vm593_vm6, %v586_v17, 920167782  ;;  %v606_v6 = vshll.u32 %v566_v34, 8  ;;  %v602_v61 = vsel %vm590_vm5, %v580_v32, %v583_v36 }
  0x83   :  { %v600_v11 = vsel %vm592_vm7, %v583_v36, %v599_v59  ;;  %v603_v7 = vsel %vm593_vm6, %v589_v37, 1326507024  ;;  %v596_v55 = vsel %vm592_vm7, %v580_v32, %v595_v63  ;;  %v427_v44 = vor.u32 %v426_v46, %v425_v19 }
  0x84   :  { %v1214_v1 = vadd.s32 4294967294, %v523_v12  ;;  %v601_v52 = vsel %vm591_vm8, %v598_v57, %v600_v11  ;;  %v604_v58 = vsel %vm592_vm7, %v586_v17, %v603_v7  ;;  %v431_v47 = vor.u32 4788187, %v430_v60 }
  0x85   :  { %v511_v48 = vadd.s32 %v1562_v54, %v1567_v25  ;;  %v605_v23 = vsel %vm591_vm8, %v602_v61, %v604_v58  ;;  %v1622_v10 = vmul.u32.u64.low %v606_v6, %v601_v52  ;;  %v1623_v3 = vmul.u32.u64.high %v606_v6, %v601_v52, %v1622_v10 }
  0x86   :  { %vm1215_vm9 = vcmp.lt.s32.totalorder %v1214_v1, 0  ;;  %v597_v53 = vsel %vm591_vm8, %v594_v56, %v596_v55  ;;  %v1627_v42 = vmul.u32.u64.low %v606_v6, %v605_v23  ;;  %v1628_v43 = vmul.u32.u64.high %v606_v6, %v605_v23, %v1627_v42 }
  0x87   :  { %v526_v45 = vsel %vm1215_vm9, 0, %v1214_v1  ;;  %v329_v24 = vand.u32 2147483647, %v328_v40  ;;  %v331_v0 = vcvt.s32.f32 %v1601_v26  ;;  %v208_v27 = vmul.f32 0.6931472, %v1266_v33 }
  0x88   :  { %v531_v18 = vsub.s32 4294967266, %v526_v45  ;;  %v527_v21 = vsub.s32 32, %v526_v45  ;;  %v432_v29 = vand.u32 2147483647, %v431_v47  ;;  %v434_v54 = vcvt.s32.f32 %v427_v44 }
  0x89   :  { %v528_v25 = vshll.u32 %v1588_v62, %v526_v45  ;;  %v613_v31 = vmul.u32 %v606_v6, %v597_v53  ;;  %v616_v32 = vadd.s32 1, %v1623_v3  ;;  %v1634_v34 = vmul.f32 -2.0, %v1580_v16 }
  0x8a   :  { %v532_v22 = vadd.s32 127, %v531_v18  ;;  %v529_v30 = vshrl.u32 %v511_v48, %v527_v21  ;;  %v332_v51 = vmul.f32 %v331_v0, %v329_v24  ;;  %vm615_vm10 = vc.u32 %v1628_v43, %v1622_v10 }
  0x8b   :  { %v210_v8 = vmul.f32 0.6931472, %v1268_v35  ;;  %v1638_v17 = vmul.f32 -2.0, %v208_v27  ;;  %v617_v26 = vsel %vm615_vm10, %v616_v32, %v1623_v3  ;;  %v435_v33 = vmul.f32 %v434_v54, %v432_v29 }
  0x8c   :  { %v533_v5 = vshll.u32 %v532_v22, 23  ;;  %v530_v12 = vor.u32 %v529_v30, %v528_v25  ;;  %v618_v36 = vadd.s32 %v617_v26, %v613_v31  ;;  %1271 = vrsqrt.f32 %v1634_v34 }
  0x8d   :  { %v333_v37 = vxor.u32 2147483648, %v332_v51  ;;  %v212_v46 = vmul.f32 0.6931472, %v1270_v39  ;;  %v1642_v16 = vmul.f32 -2.0, %v210_v8  ;;  %1273 = vrsqrt.f32 %v1638_v17 }
  0x8e   :  { %v534_v62 = vor.u32 4788187, %v533_v5  ;;  %v619_v19 = vadd.s32 536870912, %v618_v36  ;;  %vm251_vm11 = vcmp.lt.s32.totalorder %v1394_v14, 0  ;;  %v436_v35 = vxor.u32 2147483648, %v435_v33 }
  0x8f   :  { %v537_v1 = vcvt.s32.f32 %v530_v12  ;;  %vm354_vm12 = vcmp.lt.s32.totalorder %v1396_v15, 0  ;;  %vm1651_vm13 = vcmp.le.f32.partialorder %v249_v38, 0.7853982  ;;  %v334_v39 = vsel %vm251_vm11, %v333_v37, %v332_v51 }
  0x90   :  { %v535_v60 = vand.u32 2147483647, %v534_v62  ;;  %v1646_v63 = vshrl.u32 %v619_v19, 30  ;;  %v1658_v56 = vmul.f32 -2.0, %v212_v46  ;;  %vm1662_vm14 = vcmp.le.f32.partialorder %v352_v49, 0.7853982 }
  0x91   :  { %1275 = vrsqrt.f32 %v1642_v16  ;;  %v437_v38 = vsel %vm354_vm12, %v436_v35, %v435_v33  ;;  %v335_v61 = vsub.s32 4, %v1476_v41  ;;  %v337_v7 = vsel %vm1651_vm13, %v1394_v14, %v334_v39 }
  0x92   :  { %v621_v40 = vshll.u32 %v1646_v63, 30  ;;  %v538_v6 = vmul.f32 %v537_v1, %v535_v60  ;;  %1277 = vrsqrt.f32 %v1658_v56  ;;  %v438_v55 = vsub.s32 4, %v1523_v28 }
  0x93   :  { %v440_v52 = vsel %vm1662_vm14, %v1396_v15, %v437_v38  ;;  %1279 = vcosq.f32 %v337_v7  ;;  %v336_v48 = vsel %vm251_vm11, %v335_v61, %v1476_v41  ;;  %vm457_vm15 = vcmp.lt.s32.totalorder %v1408_v50, 0 }
  0x94   :  { %v1669_v11 = vsub.s32 %v618_v36, %v621_v40  ;;  %v539_v58 = vxor.u32 2147483648, %v538_v6  ;;  %1281 = vsinq.f32 %v337_v7  ;;  %vm219_vm0 = vcmp.eq.f32.partialorder %v1634_v34, inf }
  0x95   :  { %1283 = vcosq.f32 %v440_v52  ;;  %v439_v23 = vsel %vm354_vm12, %v438_v55, %v1523_v28  ;;  %vm1693_vm1 = vcmp.le.f32.partialorder %v455_v4, 0.7853982  ;;  %vm221_vm2 = vcmp.eq.f32.partialorder %v1634_v34, 0.0 }
  0x96   :  { %v624_v45 = vsub.s32 0, %v1669_v11  ;;  %v1272_v49 = vpop.eup %1271  ;;  %1285 = vsinq.f32 %v440_v52  ;;  %v338_v41 = vsel %vm1651_vm13, 0, %v336_v48  ;;  %v540_v22 = vsel %vm457_vm15, %v539_v58, %v538_v6 }
  0x97   :  { %v1274_v47 = vpop.eup %1273  ;;  %v218_v18 = vmul.f32 %v1272_v49, %v1634_v34  ;;  %v222_v42 = vand.u32 2147483648, %v1634_v34  ;;  %vm226_vm3 = vcmp.eq.f32.partialorder %v1638_v17, inf  ;;  %v229_v4 = vand.u32 2147483648, %v1638_v17 }
  0x98   :  { %v1217_v44 = vmin.u32 %v624_v45, %v1669_v11  ;;  %v225_v28 = vmul.f32 %v1274_v47, %v1638_v17  ;;  %v441_v27 = vsel %vm1662_vm14, 0, %v439_v23  ;;  %v614_v29 = vadd.s32 %v1622_v10, %v1628_v43 }
  0x99   :  { %v220_v0 = vsel %vm219_vm0, %v1634_v34, %v218_v18  ;;  %v541_v54 = vsub.s32 4, %v1577_v9  ;;  %v543_v25 = vsel %vm1693_vm1, %v1408_v50, %v540_v22  ;;  %v758_v5 = vadd.s32 3, %v338_v41 }
  0x9a   :  { %v626_v21 = vclz %v1217_v44  ;;  %v236_v31 = vand.u32 2147483648, %v1642_v16  ;;  %v1719_v33 = vsel %vm221_vm2, %v222_v42, %v220_v0  ;;  %v1724_v43 = vand.u32 3, %v338_v41 }
  0x9b   :  { %v1276_v24 = vpop.eup %1275  ;;  %v1726_v12 = vand.u32 3, %v441_v27  ;;  %1287 = vcosq.f32 %v543_v25  ;;  %v862_v19 = vadd.s32 3, %v441_v27  ;;  %v227_v35 = vsel %vm226_vm3, %v1638_v17, %v225_v28 }
  0x9c   :  { %v1218_v53 = vadd.s32 4294967294, %v626_v21  ;;  %v1278_v26 = vpop.eup %1277  ;;  %v1722_v10 = vmul.f32 %v1276_v24, %v1642_v16  ;;  %vm228_vm5 = vcmp.eq.f32.partialorder %v1638_v17, 0.0  ;;  %v542_v34 = vsel %vm457_vm15, %v541_v54, %v1577_v9 }
  0x9d   :  { %v1280_v62 = vpop.eup %1279  ;;  %1289 = vsinq.f32 %v543_v25  ;;  %vm560_vm6 = vcmp.lt.s32.totalorder %v1515_v20, 0  ;;  %v759_v60 = vand.u32 3, %v758_v5  ;;  %v1737_v57 = vmul.f32 %v1278_v26, %v1658_v56 }
  0x9e   :  { %vm1219_vm4 = vcmp.lt.s32.totalorder %v1218_v53, 0  ;;  %v1282_v46 = vpop.eup %1281  ;;  %vm1741_vm7 = vcmp.le.f32.partialorder %v558_v13, 0.7853982  ;;  %vm343_vm8 = vcmp.lt.s32.totalorder %v1724_v43, 2  ;;  %vm344_vm9 = vcmp.eq.s32.totalorder %v1724_v43, 0 }
  0x9f   :  { %v629_v30 = vsel %vm1219_vm4, 0, %v1218_v53  ;;  %v1284_v1 = vpop.eup %1283  ;;  %vm347_vm10 = vcmp.eq.s32.totalorder %v1724_v43, 2  ;;  %vm446_vm11 = vcmp.lt.s32.totalorder %v1726_v12, 2  ;;  %v544_v9 = vsel %vm1693_vm1, 0, %v542_v34 }
  0xa0   :  { %v630_v32 = vsub.s32 32, %v629_v30  ;;  %v631_v51 = vshll.u32 %v1669_v11, %v629_v30  ;;  %v634_v8 = vsub.s32 4294967266, %v629_v30  ;;  %v1286_v38 = vpop.eup %1285  ;;  %v863_v13 = vand.u32 3, %v862_v19 }
  0xa1   :  { %v345_v61 = vxor.u32 2147483648, %v1282_v46  ;;  %v348_v7 = vxor.u32 2147483648, %v1280_v62  ;;  %vm761_vm14 = vcmp.eq.s32.totalorder %v759_v60, 0  ;;  %vm764_vm15 = vcmp.eq.s32.totalorder %v759_v60, 2 }
  0xa2   :  { %v632_v36 = vshrl.u32 %v614_v29, %v630_v32  ;;  %v635_v37 = vadd.s32 127, %v634_v8  ;;  %v448_v45 = vxor.u32 2147483648, %v1286_v38  ;;  %v451_v49 = vxor.u32 2147483648, %v1284_v1 }
  0xa3   :  { %v644_v52 = vsub.s32 4, %v1646_v63  ;;  %vm447_vm1 = vcmp.eq.s32.totalorder %v1726_v12, 0  ;;  %vm450_vm2 = vcmp.eq.s32.totalorder %v1726_v12, 2  ;;  %vm760_vm3 = vcmp.lt.s32.totalorder %v759_v60, 2 }
  0xa4   :  { %v633_v40 = vor.u32 %v632_v36, %v631_v51  ;;  %v636_v59 = vshll.u32 %v635_v37, 23  ;;  %v966_v58 = vadd.s32 3, %v544_v9  ;;  %v548_v44 = vand.u32 3, %v544_v9 }
  0xa5   :  { %vm865_vm4 = vcmp.eq.s32.totalorder %v863_v13, 0  ;;  %vm868_vm12 = vcmp.eq.s32.totalorder %v863_v13, 2  ;;  %v346_v48 = vsel %vm344_vm9, %v1280_v62, %v345_v61  ;;  %v349_v18 = vsel %vm347_vm10, %v348_v7, %v1282_v46  ;;  %v1288_v3 = vpop.eup %1287 }
  0xa6   :  { %v637_v6 = vor.u32 4788187, %v636_v59  ;;  %v640_v11 = vcvt.s32.f32 %v633_v40  ;;  %v763_v21 = vsel %vm761_vm14, %v1280_v62, %v345_v61  ;;  %v766_v23 = vsel %vm764_vm15, %v348_v7, %v1282_v46 }
  0xa7   :  { %v449_v41 = vsel %vm447_vm1, %v1284_v1, %v448_v45  ;;  %v452_v22 = vsel %vm450_vm2, %v451_v49, %v1286_v38  ;;  %v645_v42 = vsel %vm560_vm6, %v644_v52, %v1646_v63  ;;  %v1290_v28 = vpop.eup %1289  ;;  %vm235_vm0 = vcmp.eq.f32.partialorder %v1642_v16, 0.0 }
  0xa8   :  { %v638_v55 = vand.u32 2147483647, %v637_v6  ;;  %vm240_vm9 = vcmp.eq.f32.partialorder %v1658_v56, inf  ;;  %vm864_vm13 = vcmp.lt.s32.totalorder %v863_v13, 2  ;;  %v867_v24 = vsel %vm865_vm4, %v1284_v1, %v448_v45  ;;  %v1091_v1 = vpop.permute.xlu0 %1090 }
  0xa9   :  { %v870_v0 = vsel %vm868_vm12, %v451_v49, %v1286_v38  ;;  %v967_v27 = vand.u32 3, %v966_v58  ;;  %v230_v29 = vsel %vm228_vm5, %v229_v4, %v227_v35  ;;  %v350_v54 = vsel %vm343_vm8, %v346_v48, %v349_v18 }
  0xaa   :  { %v641_v47 = vmul.f32 %v640_v11, %v638_v55  ;;  %vm550_vm10 = vcmp.eq.s32.totalorder %v548_v44, 0  ;;  %v453_v25 = vsel %vm446_vm11, %v449_v41, %v452_v22  ;;  %v647_v5 = vsel %vm1741_vm7, 0, %v645_v42 }
  0xab   :  { %v767_v17 = vsel %vm760_vm3, %v763_v21, %v766_v23  ;;  %v551_v4 = vxor.u32 2147483648, %v1290_v28  ;;  %v554_v32 = vxor.u32 2147483648, %v1288_v3  ;;  %v871_v51 = vsel %vm864_vm13, %v867_v24, %v870_v0 }
  0xac   :  { %v642_v53 = vxor.u32 2147483648, %v641_v47  ;;  %vm553_vm5 = vcmp.eq.s32.totalorder %v548_v44, 2  ;;  %vm969_vm8 = vcmp.eq.s32.totalorder %v967_v27, 0  ;;  %vm1846_vm12 = vweird.f32 %v1394_v14 }
  0xad   :  { %v351_v8 = vsel %vm1846_vm12, nan, %v350_v54  ;;  %vm1847_vm11 = vweird.f32 %v1396_v15  ;;  %vm1848_vm14 = vmmov %vm1846_vm12  ;;  %v1070_v12 = vadd.s32 3, %v647_v5  ;;  %vm549_vm13 = vcmp.lt.s32.totalorder %v548_v44, 2 }
  0xae   :  { %v643_v63 = vsel %vm560_vm6, %v642_v53, %v641_v47  ;;  %vm972_vm6 = vcmp.eq.s32.totalorder %v967_v27, 2  ;;  %v454_v26 = vsel %vm1847_vm11, nan, %v453_v25  ;;  %v768_v43 = vsel %vm1848_vm14, nan, %v767_v17  ;;  %vm1850_vm15 = vmmov %vm1847_vm11 }
  0xaf   :  { %v646_v30 = vsel %vm1741_vm7, %v1515_v20, %v643_v63  ;;  %vm1849_vm7 = vcmp.eq.f32.partialorder %v1642_v16, inf  ;;  %v872_v36 = vsel %vm1850_vm15, nan, %v871_v51  ;;  %vm968_vm1 = vcmp.lt.s32.totalorder %v967_v27, 2  ;;  %v1086_v51 = vld [vmem:[#allocation4] sm:$0xff] }
  0xb0   :  { %1291 = vcosq.f32 %v646_v30  ;;  %v234_v62 = vsel %vm1849_vm7, %v1642_v16, %v1722_v10  ;;  %v552_v37 = vsel %vm550_vm10, %v1288_v3, %v551_v4  ;;  %v555_v19 = vsel %vm553_vm5, %v554_v32, %v1290_v28 }
  0xb1   :  { %1293 = vsinq.f32 %v646_v30  ;;  %v971_v46 = vsel %vm969_vm8, %v1288_v3, %v551_v4  ;;  %v974_v35 = vsel %vm972_vm6, %v554_v32, %v1290_v28  ;;  %v661_v34 = vmul.f32 %v351_v8, %v1719_v33  ;;  %v1087_v8 = vld [vmem:[#allocation4 + $0x8] sm:$0xff] }
  0xb2   :  { %v662_v14 = vmul.f32 %v454_v26, %v230_v29  ;;  %v1081_v60 = vmul.f32 %v768_v43, %v1719_v33  ;;  %vm547_vm2 = vweird.f32 %v1408_v50  ;;  %v651_v39 = vand.u32 3, %v647_v5 }
  0xb3   :  { %v1071_v10 = vand.u32 3, %v1070_v12  ;;  %vm242_vm3 = vcmp.eq.f32.partialorder %v1658_v56, 0.0  ;;  %v556_v15 = vsel %vm549_vm13, %v552_v37, %v555_v19  ;;  %v975_v40 = vsel %vm968_vm1, %v971_v46, %v974_v35 }
  0xb4   :  { %v1082_v59 = vmul.f32 %v872_v36, %v230_v29  ;;  %v237_v38 = vsel %vm235_vm0, %v236_v31, %v234_v62  ;;  %v241_v33 = vsel %vm240_vm9, %v1658_v56, %v1737_v57  ;;  %v243_v9 = vand.u32 2147483648, %v1658_v56 }
  0xb5   :  { %v1351_v6 = vmov 1983009808   ;;  %vm650_vm4 = vweird.f32 %v1515_v20  ;;  %v1093_v13 = vmul.f32 %v1091_v1, %v661_v34  ;;  %v1094_v61 = vmul.f32 %v1091_v1, %v662_v14 }
  0xb6   :  { %v1104_v11 = vunpack.c.l.s4 %v1351_v6  ;;  %v1121_v7 = vmul.f32 %v1091_v1, %v1081_v60  ;;  %v557_v49 = vsel %vm547_vm2, nan, %v556_v15  ;;  %vm656_vm10 = vcmp.eq.s32.totalorder %v651_v39, 2 }
  0xb7   :  { %v976_v16 = vsel %vm547_vm2, nan, %v975_v40  ;;  %vm1076_vm0 = vcmp.eq.s32.totalorder %v1071_v10, 2  ;;  %vm653_vm9 = vcmp.eq.s32.totalorder %v651_v39, 0  ;;  %vm1073_vm5 = vcmp.eq.s32.totalorder %v1071_v10, 0 }
  0xb8   :  { %v1122_v55 = vmul.f32 %v1091_v1, %v1082_v59  ;;  %vm652_vm8 = vcmp.lt.s32.totalorder %v651_v39, 2  ;;  %vm1072_vm6 = vcmp.lt.s32.totalorder %v1071_v10, 2  ;;  %v1105_v58 = vunpack.c.0.s8 %v1104_v11 }
  0xb9   :  { %v663_v47 = vmul.f32 %v557_v49, %v237_v38  ;;  %v1083_v18 = vmul.f32 %v976_v16, %v237_v38  ;;  %v244_v21 = vsel %vm242_vm3, %v243_v9, %v241_v33  ;;  %v1101_v22 = vcombine.low %v1093_v13, %v1094_v61 }
  0xba   :  { %v1292_v45 = vpop.eup %1291  ;;  %v1108_v28 = vsub.s32 %v1105_v58, %v1385_v2  ;;  %v1129_v24 = vcombine.low %v1121_v7, %v1122_v55 }
  0xbb   :  { %v1294_v31 = vpop.eup %1293  ;;  %v657_v57 = vxor.u32 2147483648, %v1292_v45  ;;  %v1095_v29 = vmul.f32 %v1091_v1, %v663_v47  ;;  %v1123_v54 = vmul.f32 %v1091_v1, %v1083_v18 }
  0xbc   :  { %v654_v52 = vxor.u32 2147483648, %v1294_v31  ;;  %v1109_v30 = vrot.slane %v1101_v22, %v1108_v28  ;;  %v1137_v17 = vrot.slane %v1129_v24, %v1108_v28 }
  0xbd   :  { %v658_v44 = vsel %vm656_vm10, %v657_v57, %v1294_v31  ;;  %v1078_v48 = vsel %vm1076_vm0, %v657_v57, %v1294_v31 }
  0xbe   :  { %v655_v23 = vsel %vm653_vm9, %v1292_v45, %v654_v52  ;;  %v1075_v50 = vsel %vm1073_vm5, %v1292_v45, %v654_v52 }
  0xbf   :  { %v659_v3 = vsel %vm652_vm8, %v655_v23, %v658_v44  ;;  %v1079_v41 = vsel %vm1072_vm6, %v1075_v50, %v1078_v48 }
  0xc0   :  { %v660_v53 = vsel %vm650_vm4, nan, %v659_v3  ;;  %v1080_v42 = vsel %vm650_vm4, nan, %v1079_v41 }
  0xc1   :  { %v664_v0 = vmul.f32 %v660_v53, %v244_v21  ;;  %v1084_v27 = vmul.f32 %v1080_v42, %v244_v21 }
  0xc3   :  { %v1096_v56 = vmul.f32 %v1091_v1, %v664_v0  ;;  %v1124_v63 = vmul.f32 %v1091_v1, %v1084_v27 }
  0xc5   :  { %v1102_v25 = vcombine.low %v1095_v29, %v1096_v56  ;;  %v1130_v5 = vcombine.low %v1123_v54, %v1124_v63 }
  0xc7   :  { %v1116_v4 = vrot.slane %v1102_v25, %v1108_v28  ;;  %v1144_v32 = vrot.slane %v1130_v5, %v1108_v28 }
  0xc9   :  { %v1117_v20 = vcombine.low %v1109_v30, %v1116_v4  ;;  %v1145_v26 = vcombine.low %v1137_v17, %v1144_v32 }
  0xcb   :  { %v1119_v2 = vadd.f32 %v1117_v20, %v1086_v51  ;;  %v1147_v43 = vadd.f32 %v1145_v26, %v1087_v8 }
  0xcd   :  { %1120 = vst [vmem:[#allocation7] sm:$0xff] %v1119_v2  ;;  %1148 = vst [vmem:[#allocation7 + $0x8] sm:$0xff] %v1147_v43 }
  0xce   :  { %1328 = shalt.err (!%p1325_p12)
}
  0xcf   :  { %s1329_s30 = scalar_lea.hbm %s1837_s3, 256 }
  0xd0   :  { %p1330_p13 = scmp.ne.s32.totalorder %s1837_s3, %s1329_s30  ;;  %p1333_p0 = scmp.lt.u32.totalorder %s1329_s30, %s1837_s3 }
  0xd2   :  { %p1335_p1 = pnand %p1333_p0, %p1330_p13 }
  0xd4   :  { %1338 = shalt.err (!%p1335_p1)
}
  0xd5   :  { %1158 = dma.vmem_to_hbm [thread:$0]  %s1156_s1, 256, %s1837_s3, [#allocation6]  }
  0xd6   :  { %1341 = dma.done.wait [#allocation6], 256  }
  0xd7   :  { %1342 = vsyncadd [#allocation6], 4294967040 }
  0xd8   :  { %1162 = vsyncpa [#allocation5], 1 }
  0xd9   :  { %1163 = vsyncpa [#allocation6], 1 }

</bundles_post_ra>
